<compile_context>
chip_gen: v7x
topology: tpu7x:2x2x1
jax: 0.10.0
libtpu: 0.0.40
codegen_flags: <defaults>
</compile_context>

<pallas_src>
import numpy as np
import jax
import jax.numpy as jnp
from jax.experimental import pallas as pl
from jax.experimental.pallas import tpu as pltpu


# --------------------------------------------------------------------------
# Kernel factory.  One grid step processes `nb` whole batch elements,
# flattened to (nb*L, C) rows:
#   res   = BN2( Conv3x1_s( PReLU( Conv3x1_1( BN1(x) ) ) ) )
#   short = BNs( Conv1x1_s(x) )      (or MaxPool1d(1, s) == strided slice)
#   out   = res + short
# --------------------------------------------------------------------------
def _make_kernel(nb, L, Lout, stride, identity, mxu_dtype, use_xbuf):
    NL = nb * L
    NLo = nb * Lout
    aligned = (L % stride == 0)
    f32 = jnp.float32
    PAD = 8  # leading pad rows in the h scratch: prev-tap read = offset -1
    dot_prec = (jax.lax.Precision.HIGHEST
                if jnp.dtype(mxu_dtype) == jnp.float32 else None)

    def kernel(*refs):
        (x_ref, w1_ref, alpha_ref, w2_ref,
         bn1_s_ref, bn1_b_ref, bn2_b_ref) = refs[:7]
        i = 7
        if not identity:
            ws_ref, bns_b_ref = refs[i], refs[i + 1]
            i += 2
        o_ref = refs[i]
        i += 1
        hbuf = xbuf = None
        if stride > 1:
            hbuf = refs[i]
            i += 1
            if use_xbuf:
                xbuf = refs[i]
                i += 1

        C = x_ref.shape[1]
        D = o_ref.shape[1]

        # ---- BN1 (element-wise, f32) ------------------------------------
        xf = x_ref[...].astype(f32)                       # raw input rows
        xn = xf * bn1_s_ref[...] + bn1_b_ref[...]         # BatchNorm1d(in_channel)

        # Row position inside its batch element; the masks reproduce the zero
        # padding of the 3-tap convs at batch-element boundaries.
        posC = jax.lax.broadcasted_iota(jnp.int32, (NL, C), 0) % L

        # ---- conv1: three taps fused into one (NL, 3C) @ (3C, D) dot ----
        x_prev = jnp.where(posC == 0, 0.0, pltpu.roll(xn, 1, axis=0))
        x_next = jnp.where(posC == L - 1, 0.0, pltpu.roll(xn, NL - 1, axis=0))
        c1 = jnp.concatenate([x_prev, xn, x_next], axis=1).astype(mxu_dtype)
        h = jnp.dot(c1, w1_ref[...],
                    preferred_element_type=f32, precision=dot_prec)

        # ---- PReLU(depth) (f32) -----------------------------------------
        h = jnp.where(h > 0, h, alpha_ref[...] * h)

        w2 = w2_ref[...]                                  # (3D, D), bn2-scaled
        b2 = bn2_b_ref[...]
        if not identity:
            ws = ws_ref[...]                              # (C, D), bns-scaled
            bns_b = bns_b_ref[...]

        def shortcut(xs_f32):
            # xs_f32: raw x rows at the output positions (f32).
            if identity:
                return xs_f32                             # MaxPool1d(1, stride)
            return jnp.dot(xs_f32.astype(mxu_dtype), ws,
                           preferred_element_type=f32, precision=dot_prec) + bns_b

        def conv2(prv, mid, nxt):
            c2 = jnp.concatenate([prv, mid, nxt], axis=1).astype(mxu_dtype)
            return jnp.dot(c2, w2,
                           preferred_element_type=f32, precision=dot_prec)

        if stride == 1:
            posD = jax.lax.broadcasted_iota(jnp.int32, (NL, D), 0) % L
            h_prev = jnp.where(posD == 0, 0.0, pltpu.roll(h, 1, axis=0))
            h_next = jnp.where(posD == L - 1, 0.0, pltpu.roll(h, NL - 1, axis=0))
            y = conv2(h_prev, h, h_next)
            o_ref[...] = (y + b2 + shortcut(xf)).astype(o_ref.dtype)
            return

        # ---- stride > 1: conv2 only at the strided output rows ----------
        hbuf[PAD:PAD + NL, :] = h                         # single (NL, D) f32 store
        if use_xbuf:                                      # x is 16-bit in HBM: keep a
            xbuf[...] = xf                                # 32-bit copy for strided reads

        def x_rows(start, count):
            if use_xbuf:
                return xbuf[pl.ds(start, count, stride=stride), :]
            return x_ref[pl.ds(start, count, stride=stride), :].astype(f32)

        if aligned:
            # Batch boundaries land on the global strided grid -> one read/tap.
            mid = hbuf[pl.ds(PAD, NLo, stride=stride), :]
            nxt = hbuf[pl.ds(PAD + 1, NLo, stride=stride), :]   # never crosses a boundary
            prv_raw = hbuf[pl.ds(PAD - 1, NLo, stride=stride), :]
            l0 = (jax.lax.broadcasted_iota(jnp.int32, (NLo, D), 0) % Lout) == 0
            prv = jnp.where(l0, 0.0, prv_raw)             # pad/garbage rows are masked
            y = conv2(prv, mid, nxt)
            o_ref[...] = (y + b2 + shortcut(x_rows(0, NLo))).astype(o_ref.dtype)
        else:
            # General L % stride != 0 fallback (slow path; prefer shapes with
            # L % stride == 0 so the vectorized branch above is taken).
            lpos = jax.lax.broadcasted_iota(jnp.int32, (Lout, D), 0) * stride
            m_first = lpos == 0
            m_last = lpos + 1 >= L

            @pl.loop(0, nb)
            def _(n):
                base = PAD + n * L
                mid = hbuf[pl.ds(base, Lout, stride=stride), :]
                nxt = jnp.where(m_last, 0.0,
                                hbuf[pl.ds(base + 1, Lout, stride=stride), :])
                prv = jnp.where(m_first, 0.0,
                                hbuf[pl.ds(base - 1, Lout, stride=stride), :])
                y = conv2(prv, mid, nxt)
                sc = shortcut(x_rows(n * L, Lout))
                o_ref[pl.ds(n * Lout, Lout), :] = (y + b2 + sc).astype(o_ref.dtype)

    return kernel


# --------------------------------------------------------------------------
# Batch-block chooser: biggest (8,128)-legal block under a VMEM budget, with
# a preference for >=4 (and even) grid steps so DMAs are pipelined and the
# parallel axis can shard across v7x's two TensorCores.
# --------------------------------------------------------------------------
def _choose_batch_block(N, L, Lout, C, D, stride, act_bytes, use_xbuf,
                        budget_bytes=20 * 1024 * 1024):
    def legal(nb):
        if nb == N:            # full-array blocks are always BlockSpec-legal
            return True
        return (nb * L) % 8 == 0 and (nb * Lout) % 8 == 0

    def vmem_bytes(nb):
        blocks = 2 * (nb * L * C * act_bytes + nb * Lout * D * 4)  # dbl-buffered
        scratch = 0
        if stride > 1:
            scratch += (nb * L + 16) * D * 4
            if use_xbuf:
                scratch += nb * L * C * 4
        return blocks + scratch

    divisors = [d for d in range(1, N + 1) if N % d == 0]
    cands = [d for d in divisors if legal(d) and vmem_bytes(d) <= budget_bytes]
    if not cands:
        cands = [d for d in divisors if legal(d)] or [N]
    return max(cands, key=lambda d: (min(N // d, 4), (N // d) % 2 == 0, d))


# --------------------------------------------------------------------------
# NLC-layout entry point (no transposes): x_nlc (N, L, C) -> (N, Lout, depth).
# --------------------------------------------------------------------------
def bottleneck_res_pallas_nlc(x_nlc, params, in_channel, depth, stride,
                              batch_block=None, mxu_dtype=jnp.bfloat16):
    eps = 1e-5
    f32 = jnp.float32
    N, L, C = x_nlc.shape
    assert C == in_channel and stride >= 1
    Lout = (L - 1) // stride + 1
    D = depth
    identity = (in_channel == depth)
    mxu_dtype = jnp.dtype(mxu_dtype)
    act_bytes = mxu_dtype.itemsize
    use_xbuf = (stride > 1) and (act_bytes < 4)   # keep strided reads 32-bit

    def fold_bn(gamma, beta, mean, var):
        s = gamma / jnp.sqrt(var + eps)
        return s, beta - mean * s

    bn1_s, bn1_b = fold_bn(params['bn1_gamma'], params['bn1_beta'],
                           params['bn1_mean'], params['bn1_var'])
    bn2_s, bn2_b = fold_bn(params['bn2_gamma'], params['bn2_beta'],
                           params['bn2_mean'], params['bn2_var'])

    # (D, C, 3) -> taps stacked on the contraction dim: (3*C, D).
    w1 = jnp.transpose(params['w1'], (2, 1, 0)).reshape(3 * C, D).astype(mxu_dtype)
    # bn2 scale folded into the conv2 output columns -> (3*D, D).
    w2 = (jnp.transpose(params['w2'], (2, 1, 0))
          * bn2_s[None, None, :]).reshape(3 * D, D).astype(mxu_dtype)
    alpha = params['alpha'][None, :].astype(f32)

    if batch_block is None:
        nb = _choose_batch_block(N, L, Lout, C, D, stride, act_bytes, use_xbuf)
    else:
        nb = batch_block
    assert N % nb == 0
    if nb < N:
        assert (nb * L) % 8 == 0 and (nb * Lout) % 8 == 0, \
            "batch_block must keep the (8,128) BlockSpec constraint"

    x_flat = x_nlc.reshape(N * L, C).astype(mxu_dtype)
    args = [x_flat, w1, alpha, w2,
            bn1_s[None, :].astype(f32), bn1_b[None, :].astype(f32),
            bn2_b[None, :].astype(f32)]
    in_specs = [
        pl.BlockSpec((nb * L, C), lambda b: (b, 0)),      # x rows
        pl.BlockSpec((3 * C, D), lambda b: (0, 0)),       # conv1 taps, stacked
        pl.BlockSpec((1, D), lambda b: (0, 0)),           # PReLU alpha
        pl.BlockSpec((3 * D, D), lambda b: (0, 0)),       # conv2 taps (bn2-scaled)
        pl.BlockSpec((1, C), lambda b: (0, 0)),           # bn1 scale
        pl.BlockSpec((1, C), lambda b: (0, 0)),           # bn1 bias
        pl.BlockSpec((1, D), lambda b: (0, 0)),           # bn2 bias
    ]
    if not identity:
        bns_s, bns_b = fold_bn(params['bns_gamma'], params['bns_beta'],
                               params['bns_mean'], params['bns_var'])
        ws = (jnp.transpose(params['ws'][:, :, 0], (1, 0))
              * bns_s[None, :]).astype(mxu_dtype)         # (C, D), bns folded
        args += [ws, bns_b[None, :].astype(f32)]
        in_specs += [pl.BlockSpec((C, D), lambda b: (0, 0)),
                     pl.BlockSpec((1, D), lambda b: (0, 0))]

    scratch_shapes = []
    scratch_bytes = 0
    if stride > 1:
        scratch_shapes.append(pltpu.VMEM((nb * L + 16, D), f32))   # h taps
        scratch_bytes += (nb * L + 16) * D * 4
        if use_xbuf:
            scratch_shapes.append(pltpu.VMEM((nb * L, C), f32))    # raw-x rows
            scratch_bytes += nb * L * C * 4

    est = (2 * (nb * L * C * act_bytes + nb * Lout * D * 4) + scratch_bytes
           + (3 * C * D + 3 * D * D + C * D) * act_bytes + (2 << 20))
    vmem_limit = int(min(max(32 * 1024 * 1024, est), 64 * 1024 * 1024))

    out_flat = pl.pallas_call(
        _make_kernel(nb, L, Lout, stride, identity, mxu_dtype, use_xbuf),
        out_shape=jax.ShapeDtypeStruct((N * Lout, D), f32),
        grid_spec=pltpu.PrefetchScalarGridSpec(
            num_scalar_prefetch=0,
            grid=(N // nb,),
            in_specs=in_specs,
            out_specs=pl.BlockSpec((nb * Lout, D), lambda b: (b, 0)),
            scratch_shapes=scratch_shapes),
        compiler_params=pltpu.CompilerParams(
            dimension_semantics=("parallel",),
            vmem_limit_bytes=vmem_limit),
    )(*args)

    return out_flat.reshape(N, Lout, D)


# --------------------------------------------------------------------------
# PyTorch-layout wrapper: x (N, C, L) -> (N, depth, Lout).  NOTE: this pays
# two extra XLA transpose passes over HBM; production callers should use
# bottleneck_res_pallas_nlc directly.
# --------------------------------------------------------------------------
def bottleneck_res_pallas(x, params, in_channel, depth, stride,
                          batch_block=None, mxu_dtype=jnp.bfloat16):
    x_nlc = jnp.transpose(x, (0, 2, 1))
    out_nlc = bottleneck_res_pallas_nlc(x_nlc, params, in_channel, depth, stride,
                                        batch_block, mxu_dtype)
    return jnp.transpose(out_nlc, (0, 2, 1))


# --------------------------------------------------------------------------
# Pure-JAX reference (mirrors the PyTorch forward in eval mode).
# --------------------------------------------------------------------------
def _conv1d(x, w, stride, pad):
    return jax.lax.conv_general_dilated(
        x, w, window_strides=(stride,), padding=[(pad, pad)],
        dimension_numbers=('NCH', 'OIH', 'NCH'),
        precision=jax.lax.Precision.HIGHEST)


def _bn(x, gamma, beta, mean, var, eps=1e-5):
    s = (gamma / jnp.sqrt(var + eps))[None, :, None]
    b = (beta - mean * gamma / jnp.sqrt(var + eps))[None, :, None]
    return x * s + b


def bottleneck_res_ref(x, p, in_channel, depth, stride):
    if in_channel == depth:
        sc = x[:, :, ::stride]                       # MaxPool1d(1, stride)
    else:
        sc = _conv1d(x, p['ws'], stride, 0)
        sc = _bn(sc, p['bns_gamma'], p['bns_beta'], p['bns_mean'], p['bns_var'])
    h = _bn(x, p['bn1_gamma'], p['bn1_beta'], p['bn1_mean'], p['bn1_var'])
    h = _conv1d(h, p['w1'], 1, 1)
    h = jnp.where(h > 0, h, p['alpha'][None, :, None] * h)
    h = _conv1d(h, p['w2'], stride, 1)
    h = _bn(h, p['bn2_gamma'], p['bn2_beta'], p['bn2_mean'], p['bn2_var'])
    return h + sc


# --------------------------------------------------------------------------
# Deterministic synthetic parameters.
# --------------------------------------------------------------------------
def make_params(key, in_channel, depth):
    ks = jax.random.split(key, 10)
    return {
        'w1': 0.1 * jax.random.normal(ks[0], (depth, in_channel, 3), jnp.float32),
        'w2': 0.1 * jax.random.normal(ks[1], (depth, depth, 3), jnp.float32),
        'ws': 0.1 * jax.random.normal(ks[2], (depth, in_channel, 1), jnp.float32),
        'alpha': jnp.full((depth,), 0.25, jnp.float32),     # PReLU default init
        'bn1_gamma': 1.0 + 0.1 * jax.random.normal(ks[3], (in_channel,), jnp.float32),
        'bn1_beta': 0.1 * jax.random.normal(ks[4], (in_channel,), jnp.float32),
        'bn1_mean': 0.1 * jax.random.normal(ks[5], (in_channel,), jnp.float32),
        'bn1_var': 1.0 + 0.1 * jnp.abs(jax.random.normal(ks[6], (in_channel,), jnp.float32)),
        'bn2_gamma': 1.0 + 0.1 * jax.random.normal(ks[7], (depth,), jnp.float32),
        'bn2_beta': 0.1 * jax.random.normal(ks[8], (depth,), jnp.float32),
        'bn2_mean': jnp.zeros((depth,), jnp.float32),
        'bn2_var': jnp.ones((depth,), jnp.float32),
        'bns_gamma': jnp.ones((depth,), jnp.float32),
        'bns_beta': 0.05 * jnp.ones((depth,), jnp.float32),
        'bns_mean': jnp.zeros((depth,), jnp.float32),
        'bns_var': jnp.ones((depth,), jnp.float32),
    }


if __name__ == "__main__":
    key = jax.random.PRNGKey(0)

    def check(name, x, params, cin, d, stride, mxu_dtype, rtol, atol):
        out = jax.block_until_ready(
            bottleneck_res_pallas(x, params, cin, d, stride, mxu_dtype=mxu_dtype))
        ref = jax.block_until_ready(bottleneck_res_ref(x, params, cin, d, stride))
        np.testing.assert_allclose(np.asarray(out), np.asarray(ref),
                                   rtol=rtol, atol=atol, err_msg=name)

    # Case 1: in_channel != depth (Conv1d + BN shortcut), stride 2.
    N, Cin, D, L = 2, 4, 8, 16
    kx, kp = jax.random.split(key)
    x = jax.random.normal(kx, (N, Cin, L), jnp.float32)
    params = make_params(kp, Cin, D)
    check("conv-shortcut/stride2/f32", x, params, Cin, D, 2, jnp.float32, 1e-4, 1e-4)
    check("conv-shortcut/stride2/bf16", x, params, Cin, D, 2, jnp.bfloat16, 5e-2, 5e-2)

    # Case 2: in_channel == depth (MaxPool1d(1, stride) shortcut), stride 2.
    Cin2 = D2 = 8
    kx2, kp2 = jax.random.split(kp)
    x2 = jax.random.normal(kx2, (N, Cin2, L), jnp.float32)
    params2 = make_params(kp2, Cin2, D2)
    check("identity-shortcut/stride2/f32", x2, params2, Cin2, D2, 2, jnp.float32, 1e-4, 1e-4)
    check("identity-shortcut/stride2/bf16", x2, params2, Cin2, D2, 2, jnp.bfloat16, 5e-2, 5e-2)

    # Case 3: in_channel != depth, stride 1 (no subsampling, no scratch).
    check("conv-shortcut/stride1/f32", x, params, Cin, D, 1, jnp.float32, 1e-4, 1e-4)

    print("KERNEL_OK")
</pallas_src>

<mosaic_0001>
module attributes {stable_mosaic.version = 11 : i64} {
  func.func @kernel(%arg0: i32, %arg1: memref<16x4xf32, #tpu.memory_space<vmem>>, %arg2: memref<12x8xf32, #tpu.memory_space<vmem>>, %arg3: memref<1x8xf32, #tpu.memory_space<vmem>>, %arg4: memref<24x8xf32, #tpu.memory_space<vmem>>, %arg5: memref<1x4xf32, #tpu.memory_space<vmem>>, %arg6: memref<1x4xf32, #tpu.memory_space<vmem>>, %arg7: memref<1x8xf32, #tpu.memory_space<vmem>>, %arg8: memref<4x8xf32, #tpu.memory_space<vmem>>, %arg9: memref<1x8xf32, #tpu.memory_space<vmem>>, %arg10: memref<8x8xf32, #tpu.memory_space<vmem>>, %arg11: memref<32x8xf32, #tpu.memory_space<vmem>>) attributes {dimension_semantics = [#tpu.dimension_semantics<parallel>], iteration_bounds = array<i64: 2>, scalar_prefetch = 0 : i64, scratch_operands = 1 : i64, tpu.core_type = #tpu.core_type<tc>, window_params = [{transform_indices = @transform_0, window_bounds = array<i64: 16, 4>}, {pipeline_mode = #tpu.pipeline_mode<synchronous>, transform_indices = @transform_1, window_bounds = array<i64: 12, 8>}, {pipeline_mode = #tpu.pipeline_mode<synchronous>, transform_indices = @transform_2, window_bounds = array<i64: 1, 8>}, {pipeline_mode = #tpu.pipeline_mode<synchronous>, transform_indices = @transform_3, window_bounds = array<i64: 24, 8>}, {pipeline_mode = #tpu.pipeline_mode<synchronous>, transform_indices = @transform_4, window_bounds = array<i64: 1, 4>}, {pipeline_mode = #tpu.pipeline_mode<synchronous>, transform_indices = @transform_5, window_bounds = array<i64: 1, 4>}, {pipeline_mode = #tpu.pipeline_mode<synchronous>, transform_indices = @transform_6, window_bounds = array<i64: 1, 8>}, {pipeline_mode = #tpu.pipeline_mode<synchronous>, transform_indices = @transform_7, window_bounds = array<i64: 4, 8>}, {pipeline_mode = #tpu.pipeline_mode<synchronous>, transform_indices = @transform_8, window_bounds = array<i64: 1, 8>}, {transform_indices = @transform_9, window_bounds = array<i64: 8, 8>}]} {
    %c0 = arith.constant 0 : index
    %c0_0 = arith.constant 0 : index
    %0 = vector.load %arg1[%c0, %c0_0] : memref<16x4xf32, #tpu.memory_space<vmem>>, vector<16x4xf32>
    %c0_1 = arith.constant 0 : index
    %c0_2 = arith.constant 0 : index
    %1 = vector.load %arg5[%c0_1, %c0_2] : memref<1x4xf32, #tpu.memory_space<vmem>>, vector<1x4xf32>
    %2 = vector.broadcast %1 : vector<1x4xf32> to vector<16x4xf32>
    %3 = arith.mulf %0, %2 : vector<16x4xf32>
    %c0_3 = arith.constant 0 : index
    %c0_4 = arith.constant 0 : index
    %4 = vector.load %arg6[%c0_3, %c0_4] : memref<1x4xf32, #tpu.memory_space<vmem>>, vector<1x4xf32>
    %5 = vector.broadcast %4 : vector<1x4xf32> to vector<16x4xf32>
    %6 = arith.addf %3, %5 : vector<16x4xf32>
    %7 = tpu.iota {dimensions = array<i32: 0>} : vector<16x4xi32>
    %c16_i32 = arith.constant 16 : i32
    %c0_i32 = arith.constant 0 : i32
    %8 = arith.cmpi eq, %c16_i32, %c0_i32 : i32
    %c1_i32 = arith.constant 1 : i32
    %9 = arith.select %8, %c1_i32, %c16_i32 : i32
    %10 = vector.broadcast %9 : i32 to vector<16x4xi32>
    %11 = arith.remsi %7, %10 : vector<16x4xi32>
    %c0_i32_5 = arith.constant 0 : i32
    %12 = vector.broadcast %c0_i32_5 : i32 to vector<16x4xi32>
    %13 = arith.cmpi ne, %11, %12 : vector<16x4xi32>
    %c0_i32_6 = arith.constant 0 : i32
    %14 = vector.broadcast %c0_i32_6 : i32 to vector<16x4xi32>
    %15 = arith.cmpi slt, %11, %14 : vector<16x4xi32>
    %c0_i32_7 = arith.constant 0 : i32
    %16 = arith.cmpi slt, %9, %c0_i32_7 : i32
    %17 = vector.broadcast %16 : i1 to vector<16x4xi1>
    %18 = vector.broadcast %17 : vector<16x4xi1> to vector<16x4xi1>
    %19 = arith.xori %15, %18 : vector<16x4xi1>
    %20 = arith.andi %19, %13 : vector<16x4xi1>
    %21 = vector.broadcast %9 : i32 to vector<16x4xi32>
    %22 = arith.addi %11, %21 : vector<16x4xi32>
    %23 = arith.select %20, %22, %11 : vector<16x4xi1>, vector<16x4xi32>
    %c0_i32_8 = arith.constant 0 : i32
    %24 = vector.broadcast %c0_i32_8 : i32 to vector<16x4xi32>
    %25 = arith.cmpi eq, %23, %24 : vector<16x4xi32>
    %c1_i32_9 = arith.constant 1 : i32
    %26 = tpu.dynamic_rotate %6 by %c1_i32_9 dim 0 : vector<16x4xf32>, i32 -> vector<16x4xf32>
    %cst = arith.constant 0.000000e+00 : f32
    %27 = vector.broadcast %cst : f32 to vector<16x4xf32>
    %28 = arith.select %25, %27, %26 : vector<16x4xi1>, vector<16x4xf32>
    %c15_i32 = arith.constant 15 : i32
    %29 = vector.broadcast %c15_i32 : i32 to vector<16x4xi32>
    %30 = arith.cmpi eq, %23, %29 : vector<16x4xi32>
    %c15_i32_10 = arith.constant 15 : i32
    %31 = tpu.dynamic_rotate %6 by %c15_i32_10 dim 0 : vector<16x4xf32>, i32 -> vector<16x4xf32>
    %cst_11 = arith.constant 0.000000e+00 : f32
    %32 = vector.broadcast %cst_11 : f32 to vector<16x4xf32>
    %33 = arith.select %30, %32, %31 : vector<16x4xi1>, vector<16x4xf32>
    %34 = tpu.concatenate %28, %6, %33 in 1 : vector<16x4xf32>, vector<16x4xf32>, vector<16x4xf32> -> vector<16x12xf32>
    %c0_12 = arith.constant 0 : index
    %c0_13 = arith.constant 0 : index
    %35 = vector.load %arg2[%c0_12, %c0_13] : memref<12x8xf32, #tpu.memory_space<vmem>>, vector<12x8xf32>
    %cst_14 = arith.constant dense<0.000000e+00> : vector<16x8xf32>
    %36 = tpu.matmul %34, %35, %cst_14 {dimension_numbers = #tpu.dot_dimension_numbers<[1], [0], [0], [1], [0, 0, 1, 1], [], []>, precision = #tpu.contract_precision<fp32>} : vector<16x12xf32>, vector<12x8xf32>, vector<16x8xf32> -> vector<16x8xf32>
    %cst_15 = arith.constant 0.000000e+00 : f32
    %37 = vector.broadcast %cst_15 : f32 to vector<16x8xf32>
    %38 = arith.cmpf ogt, %36, %37 : vector<16x8xf32>
    %c0_16 = arith.constant 0 : index
    %c0_17 = arith.constant 0 : index
    %39 = vector.load %arg3[%c0_16, %c0_17] : memref<1x8xf32, #tpu.memory_space<vmem>>, vector<1x8xf32>
    %40 = vector.broadcast %39 : vector<1x8xf32> to vector<16x8xf32>
    %41 = arith.mulf %40, %36 : vector<16x8xf32>
    %42 = arith.select %38, %36, %41 : vector<16x8xi1>, vector<16x8xf32>
    %c0_18 = arith.constant 0 : index
    %c0_19 = arith.constant 0 : index
    %43 = vector.load %arg4[%c0_18, %c0_19] : memref<24x8xf32, #tpu.memory_space<vmem>>, vector<24x8xf32>
    %c0_20 = arith.constant 0 : index
    %c0_21 = arith.constant 0 : index
    %44 = vector.load %arg7[%c0_20, %c0_21] : memref<1x8xf32, #tpu.memory_space<vmem>>, vector<1x8xf32>
    %c0_22 = arith.constant 0 : index
    %c0_23 = arith.constant 0 : index
    %45 = vector.load %arg8[%c0_22, %c0_23] : memref<4x8xf32, #tpu.memory_space<vmem>>, vector<4x8xf32>
    %c0_24 = arith.constant 0 : index
    %c0_25 = arith.constant 0 : index
    %46 = vector.load %arg9[%c0_24, %c0_25] : memref<1x8xf32, #tpu.memory_space<vmem>>, vector<1x8xf32>
    %c8 = arith.constant 8 : index
    %c0_26 = arith.constant 0 : index
    %47 = vector.load %arg11[%c8, %c0_26] : memref<32x8xf32, #tpu.memory_space<vmem>>, vector<16x8xf32>
    tpu.vector_store %arg11[%c8, %c0_26], %42 {strides = array<i32>} : memref<32x8xf32, #tpu.memory_space<vmem>>, vector<16x8xf32>,
    %c8_27 = arith.constant 8 : index
    %c0_28 = arith.constant 0 : index
    %48 = tpu.strided_load %arg11[%c8_27, %c0_28] {strides = array<i32: 2, 1>} : memref<32x8xf32, #tpu.memory_space<vmem>>, vector<8x8xf32>
    %c9 = arith.constant 9 : index
    %c0_29 = arith.constant 0 : index
    %49 = tpu.strided_load %arg11[%c9, %c0_29] {strides = array<i32: 2, 1>} : memref<32x8xf32, #tpu.memory_space<vmem>>, vector<8x8xf32>
    %c7 = arith.constant 7 : index
    %c0_30 = arith.constant 0 : index
    %50 = tpu.strided_load %arg11[%c7, %c0_30] {strides = array<i32: 2, 1>} : memref<32x8xf32, #tpu.memory_space<vmem>>, vector<8x8xf32>
    %51 = tpu.iota {dimensions = array<i32: 0>} : vector<8x8xi32>
    %c8_i32 = arith.constant 8 : i32
    %c0_i32_31 = arith.constant 0 : i32
    %52 = arith.cmpi eq, %c8_i32, %c0_i32_31 : i32
    %c1_i32_32 = arith.constant 1 : i32
    %53 = arith.select %52, %c1_i32_32, %c8_i32 : i32
    %54 = vector.broadcast %53 : i32 to vector<8x8xi32>
    %55 = arith.remsi %51, %54 : vector<8x8xi32>
    %c0_i32_33 = arith.constant 0 : i32
    %56 = vector.broadcast %c0_i32_33 : i32 to vector<8x8xi32>
    %57 = arith.cmpi ne, %55, %56 : vector<8x8xi32>
    %c0_i32_34 = arith.constant 0 : i32
    %58 = vector.broadcast %c0_i32_34 : i32 to vector<8x8xi32>
    %59 = arith.cmpi slt, %55, %58 : vector<8x8xi32>
    %c0_i32_35 = arith.constant 0 : i32
    %60 = arith.cmpi slt, %53, %c0_i32_35 : i32
    %61 = vector.broadcast %60 : i1 to vector<8x8xi1>
    %62 = vector.broadcast %61 : vector<8x8xi1> to vector<8x8xi1>
    %63 = arith.xori %59, %62 : vector<8x8xi1>
    %64 = arith.andi %63, %57 : vector<8x8xi1>
    %65 = vector.broadcast %53 : i32 to vector<8x8xi32>
    %66 = arith.addi %55, %65 : vector<8x8xi32>
    %67 = arith.select %64, %66, %55 : vector<8x8xi1>, vector<8x8xi32>
    %c0_i32_36 = arith.constant 0 : i32
    %68 = vector.broadcast %c0_i32_36 : i32 to vector<8x8xi32>
    %69 = arith.cmpi eq, %67, %68 : vector<8x8xi32>
    %cst_37 = arith.constant 0.000000e+00 : f32
    %70 = vector.broadcast %cst_37 : f32 to vector<8x8xf32>
    %71 = arith.select %69, %70, %50 : vector<8x8xi1>, vector<8x8xf32>
    %72 = tpu.concatenate %71, %48, %49 in 1 : vector<8x8xf32>, vector<8x8xf32>, vector<8x8xf32> -> vector<8x24xf32>
    %cst_38 = arith.constant dense<0.000000e+00> : vector<8x8xf32>
    %73 = tpu.matmul %72, %43, %cst_38 {dimension_numbers = #tpu.dot_dimension_numbers<[1], [0], [0], [1], [0, 0, 1, 1], [], []>, precision = #tpu.contract_precision<fp32>} : vector<8x24xf32>, vector<24x8xf32>, vector<8x8xf32> -> vector<8x8xf32>
    %74 = vector.broadcast %44 : vector<1x8xf32> to vector<8x8xf32>
    %75 = arith.addf %73, %74 : vector<8x8xf32>
    %c0_39 = arith.constant 0 : index
    %c0_40 = arith.constant 0 : index
    %76 = tpu.strided_load %arg1[%c0_39, %c0_40] {strides = array<i32: 2, 1>} : memref<16x4xf32, #tpu.memory_space<vmem>>, vector<8x4xf32>
    %cst_41 = arith.constant dense<0.000000e+00> : vector<8x8xf32>
    %77 = tpu.matmul %76, %45, %cst_41 {dimension_numbers = #tpu.dot_dimension_numbers<[1], [0], [0], [1], [0, 0, 1, 1], [], []>, precision = #tpu.contract_precision<fp32>} : vector<8x4xf32>, vector<4x8xf32>, vector<8x8xf32> -> vector<8x8xf32>
    %78 = vector.broadcast %46 : vector<1x8xf32> to vector<8x8xf32>
    %79 = arith.addf %77, %78 : vector<8x8xf32>
    %80 = arith.addf %75, %79 : vector<8x8xf32>
    %c0_42 = arith.constant 0 : index
    %c0_43 = arith.constant 0 : index
    %81 = vector.load %arg10[%c0_42, %c0_43] : memref<8x8xf32, #tpu.memory_space<vmem>>, vector<8x8xf32>
    tpu.vector_store %arg10[%c0_42, %c0_43], %80 {strides = array<i32>} : memref<8x8xf32, #tpu.memory_space<vmem>>, vector<8x8xf32>,
    return
  }
  func.func @transform_0(%arg0: i32) -> (i32, i32) {
    %c0_i32 = arith.constant 0 : i32
    %c0_i32_0 = arith.constant 0 : i32
    return %arg0, %c0_i32 : i32, i32
  }
  func.func @transform_1(%arg0: i32) -> (i32, i32) {
    %c0_i32 = arith.constant 0 : i32
    %c0_i32_0 = arith.constant 0 : i32
    %c0_i32_1 = arith.constant 0 : i32
    return %c0_i32, %c0_i32_0 : i32, i32
  }
  func.func @transform_2(%arg0: i32) -> (i32, i32) {
    %c0_i32 = arith.constant 0 : i32
    %c0_i32_0 = arith.constant 0 : i32
    %c0_i32_1 = arith.constant 0 : i32
    return %c0_i32, %c0_i32_0 : i32, i32
  }
  func.func @transform_3(%arg0: i32) -> (i32, i32) {
    %c0_i32 = arith.constant 0 : i32
    %c0_i32_0 = arith.constant 0 : i32
    %c0_i32_1 = arith.constant 0 : i32
    return %c0_i32, %c0_i32_0 : i32, i32
  }
  func.func @transform_4(%arg0: i32) -> (i32, i32) {
    %c0_i32 = arith.constant 0 : i32
    %c0_i32_0 = arith.constant 0 : i32
    %c0_i32_1 = arith.constant 0 : i32
    return %c0_i32, %c0_i32_0 : i32, i32
  }
  func.func @transform_5(%arg0: i32) -> (i32, i32) {
    %c0_i32 = arith.constant 0 : i32
    %c0_i32_0 = arith.constant 0 : i32
    %c0_i32_1 = arith.constant 0 : i32
    return %c0_i32, %c0_i32_0 : i32, i32
  }
  func.func @transform_6(%arg0: i32) -> (i32, i32) {
    %c0_i32 = arith.constant 0 : i32
    %c0_i32_0 = arith.constant 0 : i32
    %c0_i32_1 = arith.constant 0 : i32
    return %c0_i32, %c0_i32_0 : i32, i32
  }
  func.func @transform_7(%arg0: i32) -> (i32, i32) {
    %c0_i32 = arith.constant 0 : i32
    %c0_i32_0 = arith.constant 0 : i32
    %c0_i32_1 = arith.constant 0 : i32
    return %c0_i32, %c0_i32_0 : i32, i32
  }
  func.func @transform_8(%arg0: i32) -> (i32, i32) {
    %c0_i32 = arith.constant 0 : i32
    %c0_i32_0 = arith.constant 0 : i32
    %c0_i32_1 = arith.constant 0 : i32
    return %c0_i32, %c0_i32_0 : i32, i32
  }
  func.func @transform_9(%arg0: i32) -> (i32, i32) {
    %c0_i32 = arith.constant 0 : i32
    %c0_i32_0 = arith.constant 0 : i32
    return %arg0, %c0_i32 : i32, i32
  }
}

</mosaic_0001>

<bundles_post_ra>
// kernel: tpu_custom_call.1
= control target key start
LH: loop header
LB: loop body
LE: loop exit
PB: predicated region body
PF: predicated region fallthrough
CT: control target
= control target key end

     0   :  { %s2337_s30 = smov 0   ;;  %s2495_s0 = inlined_call_operand.vmem [shape: f32[32,4], index: 0, kind: input, shape index: {}]   ;;  %s2496_s1 = inlined_call_operand.vmem [shape: f32[12,8], index: 1, kind: input, shape index: {}]   ;;  %s2497_s2 = inlined_call_operand.vmem [shape: f32[1,8], index: 2, kind: input, shape index: {}]   ;;  %s2498_s3 = inlined_call_operand.vmem [shape: f32[24,8], index: 3, kind: input, shape index: {}]   ;;  %s2499_s4 = inlined_call_operand.vmem [shape: f32[1,4], index: 4, kind: input, shape index: {}]   ;;  %s2500_s5 = inlined_call_operand.vmem [shape: f32[1,4], index: 5, kind: input, shape index: {}]   ;;  %s2501_s6 = inlined_call_operand.vmem [shape: f32[1,8], index: 6, kind: input, shape index: {}]   ;;  %s2502_s7 = inlined_call_operand.vmem [shape: f32[4,8], index: 7, kind: input, shape index: {}]   ;;  %s2503_s8 = inlined_call_operand.vmem [shape: f32[1,8], index: 8, kind: input, shape index: {}]   ;;  %s2504_s9 = inlined_call_operand.vmem [shape: f32[16,8], index: 9, kind: output, shape index: {}]  }
   0x1 LB: > { %s2343_s10 = sadd.s32 4294967295, %s2279_s30   ;;  %p1987_p0 = scmp.ge.s32.totalorder %s2279_s30, 1  ;;  %s2279_s30 = sphi %s2337_s30, %s19_s30  }
   0x2   : > { %p288_p1 = scmp.lt.s32.totalorder %s2279_s30, 3 }
   0x4   : > { %p289_p2 = pnand %p1987_p0, %p288_p1 }
   0x5   : > { %s1988_s11 = sshll.u32 (!%p289_p2), %s2343_s10, 1  ;;  %v353_v0 = vlaneseq (!%p289_p2)  ;;  %v1991_v2 = vld [vmem:[%s2499_s4] ss:$0 sm:$0xff] (!%p289_p2)  ;;  %v421_v9 = vld [vmem:[%s2496_s1 + $0x8] sm:$0xf] (!%p289_p2)  ;;  %vm429_vm0 = vcmask (!%p289_p2), 1043456  }
   0x6   : > { %292 = sbr.rel (%p289_p2) target bundleno = 822 (0x336), region = 56  ;;  %p324_p3 = scmp.lt.s32.totalorder (!%p289_p2), %s1988_s11, 3  ;;  %v1992_v6 = vld [vmem:[%s2500_s5] ss:$0 sm:$0xff] (!%p289_p2)  ;;  %v431_v14 = vsel (!%p289_p2), %vm429_vm0, %v421_v9, 0  ;;  %vm414_vm5 = vcmask (!%p289_p2), 31744  }
   0x7   : > { %v2348_v1 = vshrl.u32 (!%p289_p2), %v353_v0, 7  ;;  %v420_v11 = vld [vmem:[%s2496_s1] sm:$0xff] (!%p289_p2)  ;;  %v437_v16 = vand.u32 (!%p289_p2), 4294901760, %v431_v14  ;;  %s2281_s24 = smov (!%p289_p2), 4   ;;  %s2282_s25 = smov (!%p289_p2), 8   ;;  %vm417_vm6 = vcmask (!%p289_p2), 64512  }
   0x8   : > { %v434_v15 = vand.u32 (!%p289_p2), 4294901760, %v420_v11  ;;  %vm422_vm7 = vcmask (!%p289_p2), 97280   ;;  %v1993_v61 = vld [vmem:[%s2497_s2] ss:$0 sm:$0xff] (!%p289_p2)  ;;  %v949_v63 = vld [vmem:[%s2498_s3 + $0x8] sm:$0xff] (!%p289_p2)  ;;  %v2283_v9 = vmov (!%p289_p2), 0.0|0.0  }
   0x9   : > { %v355_v3 = vadd.s32 (!%p289_p2), 8, %v2348_v1  ;;  %vm393_vm1 = vcmp.lt.s32.totalorder (!%p289_p2), %v2348_v1, 7  ;;  %vm384_vm2 = vcmp.lt.s32.totalorder (!%p289_p2), %v2348_v1, 1  ;;  %v529_v24 = vsub.f32 (!%p289_p2), %v431_v14, %v437_v16  ;;  %v948_v62 = vld [vmem:[%s2498_s3] sm:$0xff] (!%p289_p2)  ;;  %2217 = vmatprep.subr.bf16.mxu1 (!%p289_p2), %v2283_v9  ;;  %s2286_s15 = smov (!%p289_p2), 16   ;;  %p329_p4 = scmp.lt.s32.totalorder (!%p289_p2), %s2343_s10, 1 }
   0xa   : > { %v2377_v22 = vpack.c.bf16 (!%p289_p2), %v437_v16, %v434_v15  ;;  %v522_v23 = vsub.f32 (!%p289_p2), %v420_v11, %v434_v15  ;;  %v360_v39 = vand.u32 (!%p289_p2), 15, %v2348_v1  ;;  %v2284_v14 = vmov (!%p289_p2), 0.0  }
   0xb   : > { %v367_v10 = vand.u32 (!%p289_p2), 15, %v355_v3  ;;  %v530_v30 = vand.u32 (!%p289_p2), 4294901760, %v529_v24  ;;  %v1001_v3 = vand.u32 (!%p289_p2), 4294901760, %v949_v63  ;;  %vm2285_vm10 = vmmov (!%p289_p2), 0  }
   0xc   : > { %2185 = vmatprep.subr.bf16.mxu0 (!%p289_p2), %v2377_v22  ;;  %v523_v29 = vand.u32 (!%p289_p2), 4294901760, %v522_v23  ;;  %v2192_v36 = vpack.c.bf16 (!%p289_p2), %v529_v24, %v522_v23  ;;  %vm380_vm4 = vcmp.eq.s32.totalorder (!%p289_p2), %v360_v39, 0  ;;  %2133 = vmatprep.mubr.msk.f32.mxu1 (!%p289_p2), %vm2285_vm10, %v2284_v14  ;;  %vm985_vm12 = vcmask (!%p289_p2), 130048  }
   0xd   : > { %s2508_s11 = smov (!%p324_p3, %s1988_s11), 3  ;;  %vm2373_vm3 = vcmp.eq.s32.totalorder %v367_v10, 15  ;;  %2187 = vmatpush3.bf16.msra.mxu0 %v2377_v22  ;;  %v531_v33 = vsub.f32 %v529_v24, %v530_v30  ;;  %vm993_vm13 = vcmask 195584   ;;  %s2510_s10 = smov (!%p329_p4, %s2343_s10), 1 }
   0xe   : > { %s1989_s12 = sshll.u32 %s2508_s11, 3  ;;  %v524_v32 = vsub.f32 %v522_v23, %v523_v29  ;;  %v2200_v38 = vpack.c.bf16 %v530_v30, %v523_v29  ;;  %s1990_s22 = sshll.u32 %s2510_s10, 3 }
   0xf   : > { %s2357_s17 = scalar_lea.vmem %s2495_s0, %s1989_s12  ;;  %v532_v35 = vand.u32 4294901760, %v531_v33 }
  0x10   : > { %v333_v4 = vld [vmem:[%s2357_s17] sm:$0xff]  ;;  %v334_v5 = vld [vmem:[%s2357_s17 + $0x8] sm:$0xff]  ;;  %v525_v34 = vand.u32 4294901760, %v524_v32 }
  0x11   : > { %v342_v7 = vmul.f32 %v1991_v2, %v333_v4  ;;  %v343_v8 = vmul.f32 %v1991_v2, %v334_v5  ;;  %v998_v2 = vand.u32 4294901760, %v948_v62  ;;  %v1469_v39 = vld [vmem:[%s2357_s17] ss:$2 sm:$0xff] }
  0x12   : > { %v2188_v37 = vpack.c.bf16 %v532_v35, %v525_v34 }
  0x13   : > { %v351_v12 = vadd.f32 %v1992_v6, %v342_v7  ;;  %v352_v13 = vadd.f32 %v1992_v6, %v343_v8  ;;  %v2403_v7 = vpack.c.bf16 %v1001_v3, %v998_v2  ;;  %v2411_v11 = vsub.f32 %v948_v62, %v998_v2 }
  0x14   : > { %2189 = vmatprep.subr.bf16.mxu0 %v2188_v37 }
  0x15   : > { %400 = vrot.lane.b32.xlu0 %v351_v12, %s2281_s24  ;;  %v382_v17 = vrot.slane %v351_v12, 7  ;;  %v391_v18 = vrot.slane %v351_v12, 1  ;;  %v392_v19 = vrot.slane %v352_v13, 1  ;;  %v383_v20 = vrot.slane %v352_v13, 7  ;;  %2219 = vmatpush3.bf16.msra.mxu1 %v2403_v7 }
  0x16   : > { %v2413_v12 = vsub.f32 %v949_v63, %v1001_v3  ;;  %2131 = vmatprep.subr.mxu1 %v2284_v14  ;;  %v1078_v16 = vand.u32 4294901760, %v2411_v11 }
  0x17   : > { %v394_v25 = vsel %vm393_vm1, %v391_v18, %v392_v19  ;;  %v395_v26 = vsel %vm393_vm1, %v392_v19, %v391_v18  ;;  %v386_v27 = vsel %vm384_vm2, %v383_v20, %v382_v17  ;;  %v385_v28 = vsel %vm384_vm2, %v382_v17, %v383_v20 }
  0x18   : > { %408 = vrot.lane.b32.xlu1 %v394_v25, %s2282_s25  ;;  %v397_v31 = vsel %vm2373_vm3, 0.0, %v395_v26  ;;  %v387_v40 = vsel %vm380_vm4, 0.0, %v386_v27  ;;  %v1085_v17 = vand.u32 4294901760, %v2413_v12  ;;  %v1079_v19 = vsub.f32 %v2411_v11, %v1078_v16 }
  0x19   : > { %402 = vrot.lane.b32.xlu0 %v352_v13, %s2281_s24  ;;  %v950_v13 = vld [vmem:[%s2498_s3 + $0x10] sm:$0xff]  ;;  %v2215_v26 = vpack.c.bf16 %v2413_v12, %v2411_v11  ;;  %v966_v27 = vand.u32 7, %v2348_v1  ;;  %v952_v1 = vld [vmem:[%s2502_s7] sm:$0xf] }
  0x1a   : > { %v2419_v15 = vand.u32 4294901760, %v950_v13  ;;  %v2221_v18 = vpack.c.bf16 %v1085_v17, %v1078_v16  ;;  %v1086_v20 = vsub.f32 %v2413_v12, %v1085_v17  ;;  %v1080_v23 = vand.u32 4294901760, %v1079_v19 }
  0x1b   : > { %vm974_vm11 = vcmp.eq.s32.totalorder %v966_v27, 0 }
  0x1c   : > { %410 = vrot.lane.b32.xlu1 %v397_v31, %s2282_s25  ;;  %2132 = vmatpush3.msra.mxu1 %v2419_v15  ;;  %v1087_v24 = vand.u32 4294901760, %v1086_v20  ;;  %v1091_v35 = vsub.f32 %v950_v13, %v2419_v15 }
  0x1d   : > { %2220 = vmatprep.subr.bf16.mxu1 %v2283_v9 }
  0x1e   : > { %v2212_v25 = vpack.c.bf16 %v1087_v24, %v1080_v23 }
  0x87   : > { %v401_v41 = vpop.permute.xlu0 %400 }
  0x88   : > { %v415_v42 = vsel %vm414_vm5, %v387_v40, %v401_v41 }
  0x8a   : > { %v409_v43 = vpop.permute.xlu1 %408 }
  0x8b   : > { %v418_v44 = vsel %vm417_vm6, %v415_v42, %v409_v43  ;;  %v403_v45 = vpop.permute.xlu0 %402  ;;  %v1477_v42 = vsel %vm414_vm5, %v1469_v39, 0 }
  0x8c   : > { %v424_v46 = vsel %vm422_vm7, %v418_v44, 0  ;;  %v416_v47 = vsel %vm414_vm5, %v385_v28, %v403_v45  ;;  %v1480_v45 = vsel %vm429_vm0, %v952_v1, 0 }
  0x8d   : > { %v500_v48 = vand.u32 4294901760, %v424_v46 }
  0x8e   : > { %v411_v49 = vpop.permute.xlu1 %410 }
  0x8f   : > { %v501_v50 = vsub.f32 %v424_v46, %v500_v48  ;;  %v419_v51 = vsel %vm417_vm6, %v416_v47, %v411_v49  ;;  %v1548_v46 = vand.u32 4294901760, %v1477_v42 }
  0x90   : > { %v427_v52 = vsel %vm422_vm7, %v419_v51, 0 }
  0x91   : > { %v510_v53 = vand.u32 4294901760, %v427_v52  ;;  %v502_v54 = vand.u32 4294901760, %v501_v50  ;;  %v1549_v49 = vsub.f32 %v1477_v42, %v1548_v46 }
  0x93   : > { %v511_v55 = vsub.f32 %v427_v52, %v510_v53  ;;  %v503_v56 = vsub.f32 %v501_v50, %v502_v54  ;;  %v1550_v51 = vand.u32 4294901760, %v1549_v49 }
  0x95   : > { %v504_v57 = vand.u32 4294901760, %v503_v56  ;;  %v512_v58 = vand.u32 4294901760, %v511_v55 }
  0x97   : > { %2062 = vmatprep.mubr.f32.mxu0 %v504_v57  ;;  %v513_v59 = vsub.f32 %v511_v55, %v512_v58 }
  0x99   : > { %v514_v60 = vand.u32 4294901760, %v513_v59  ;;  %v1994_v59 = vld [vmem:[%s2501_s6] ss:$0 sm:$0xff] }
  0x9b   : > { %2063 = vmatmul.mubr.f32.vlgmr.msra.gmra.mrb[0].mxu0 %v514_v60  ;;  %v1995_v60 = vld [vmem:[%s2503_s8] ss:$0 sm:$0xff] }
  0x9c   : > { %2191 = vmatpush3.bf16.msra.mxu0 %v2188_v37  ;;  %2069 = vmatprep.mubr.f32.mxu0 %v500_v48 }
  0x9d   : > { %2193 = vmatprep.subr.bf16.mxu0 %v2192_v36 }
  0xa3   : > { %2070 = vmatmul.mubr.f32.vlgmr.msra.gmra.mrb[0].mxu0 %v510_v53 }
  0xa4   : > { %2195 = vmatpush3.bf16.msra.mxu0 %v2192_v36  ;;  %2076 = vmatprep.mubr.f32.mxu0 %v501_v50 }
  0xa5   : > { %2197 = vmatprep.subr.bf16.mxu0 %v2377_v22 }
  0xab   : > { %2077 = vmatmul.mubr.f32.vlgmr.msra.gmra.mrb[0].mxu0 %v511_v55 }
  0xac   : > { %2199 = vmatpush3.bf16.msra.mxu0 %v2377_v22  ;;  %2083 = vmatprep.mubr.f32.mxu0 %v502_v54 }
  0xad   : > { %2201 = vmatprep.subr.bf16.mxu0 %v2200_v38 }
  0xb3   : > { %2084 = vmatmul.mubr.f32.vlgmr.msra.gmra.mrb[0].mxu0 %v512_v58 }
  0xb4   : > { %2203 = vmatpush3.bf16.msra.mxu0 %v2200_v38  ;;  %2090 = vmatprep.mubr.f32.mxu0 %v500_v48  ;;  %v1092_v38 = vand.u32 4294901760, %v1091_v35 }
  0xb5   : > { %2205 = vmatprep.subr.bf16.mxu0 %v2377_v22 }
  0xb6   : > { %v1093_v43 = vsub.f32 %v1091_v35, %v1092_v38 }
  0xb8   : > { %v1094_v47 = vand.u32 4294901760, %v1093_v43 }
  0xbb   : > { %2091 = vmatmul.mubr.f32.vlgmr.msra.gmra.mrb[0].mxu0 %v510_v53 }
  0xbc   : > { %2207 = vmatpush3.bf16.msra.mxu0 %v2377_v22  ;;  %2097 = vmatprep.mubr.f32.mxu0 %v500_v48  ;;  %v1483_v48 = vand.u32 4294901760, %v1480_v45 }
  0xbd   : > { %2208 = vmatprep.subr.bf16.mxu0 %v2283_v9 }
  0xbe   : > { %v1560_v50 = vsub.f32 %v1480_v45, %v1483_v48 }
  0xc0   : > { %v1561_v52 = vand.u32 4294901760, %v1560_v50 }
  0xc2   : > { %v1562_v54 = vsub.f32 %v1560_v50, %v1561_v52 }
  0xc3   : > { %2098 = vmatmul.mubr.f32.vlgmr.msra.gmra.mrb[0].mxu0 %v510_v53  ;;  %v1551_v53 = vsub.f32 %v1549_v49, %v1550_v51 }
  0xc4   : > { %2210 = vmatpush3.bf16.msra.mxu0 %v2403_v7  ;;  %2106 = vmatprep.mubr.msk.f32.mxu0 %vm2285_vm10, %v2284_v14  ;;  %v1563_v56 = vand.u32 4294901760, %v1562_v54 }
  0xc5   : > { %2104 = vmatprep.subr.mxu0 %v2284_v14  ;;  %v1552_v55 = vand.u32 4294901760, %v1551_v53 }
  0xc8   : > { %2105 = vmatpush3.msra.mxu0 %v2419_v15 }
  0xc9   : > { %2211 = vmatprep.subr.bf16.mxu0 %v2283_v9 }
 0x196   : > { %v2099_v0 = vpop.f32.mrb[0].mxu0 }
 0x197   : > { %vm936_vm8 = vcmp.gt.f32.partialorder %v2099_v0, 0.0  ;;  %v945_v4 = vmul.f32 %v2099_v0, %v1993_v61  ;;  %v925_v5 = vpop.f32.mrb[1].mxu0 }
 0x198   : > { %vm935_vm9 = vcmp.gt.f32.partialorder %v925_v5, 0.0  ;;  %v944_v6 = vmul.f32 %v1993_v61, %v925_v5  ;;  %v2226_v61 = vadd.f32 %v1995_v60, %v1994_v59 }
 0x199   : > { %v947_v8 = vsel %vm936_vm8, %v2099_v0, %v945_v4 }
 0x19a   : > { %955 = vst.msk [vmem:[#allocation2 + $0x10] sm:$0xff] %vm417_vm6, %v947_v8  ;;  %v946_v10 = vsel %vm935_vm9, %v925_v5, %v944_v6 }
 0x19b   : > { %954 = vst.msk [vmem:[#allocation2 + $0x8] sm:$0xff] %vm417_vm6, %v946_v10 }
 0x1a2   : > { %v959_v21 = vld [vmem:[#allocation2 + $0x9] ss:$2 sm:$0xff]  ;;  %v957_v22 = vld [vmem:[#allocation2 + $0x8] ss:$2 sm:$0xff] }
 0x1a3   : > { %981 = vrot.lane.b32.xlu1 %v959_v21, %s2286_s15  ;;  %977 = vrot.lane.b32.xlu0 %v957_v22, %s2282_s25  ;;  %v961_v28 = vld [vmem:[#allocation2 + $0x7] ss:$2 sm:$0xff]  ;;  %s332_s25 = scalar_lea.vmem %s2504_s9, %s1990_s22 }
 0x1a4   : > { %v975_v30 = vsel %vm974_vm11, 0.0, %v961_v28 }
 0x215   : > { %v982_v29 = vpop.permute.xlu1 %981  ;;  %v978_v31 = vpop.permute.xlu0 %977 }
 0x216   : > { %v984_v32 = vsel %vm417_vm6, %v975_v30, %v978_v31 }
 0x217   : > { %v986_v33 = vsel %vm985_vm12, %v984_v32, %v982_v29 }
 0x218   : > { %v995_v34 = vsel %vm993_vm13, %v986_v33, 0 }
 0x219   : > { %v1065_v36 = vand.u32 4294901760, %v995_v34 }
 0x21b   : > { %v1066_v37 = vsub.f32 %v995_v34, %v1065_v36 }
 0x21d   : > { %v1067_v40 = vand.u32 4294901760, %v1066_v37 }
 0x21f   : > { %v1068_v41 = vsub.f32 %v1066_v37, %v1067_v40  ;;  %2134 = vmatmul.mubr.f32.vlgmr.msra.gmra.mrb[0].mxu1 %v1067_v40 }
 0x220   : > { %2222 = vmatpush3.bf16.msra.mxu1 %v2221_v18  ;;  %2142 = vmatprep.mubr.msk.f32.mxu1 %vm2285_vm10, %v2284_v14 }
 0x221   : > { %v1069_v44 = vand.u32 4294901760, %v1068_v41  ;;  %2140 = vmatprep.subr.mxu1 %v2284_v14 }
 0x223   : > { %2107 = vmatmul.mubr.f32.vlgmr.msra.gmra.mrb[2].mxu0 %v1069_v44 }
 0x224   : > { %2141 = vmatpush3.msra.mxu1 %v1092_v38  ;;  %2213 = vmatpush3.bf16.msra.mxu0 %v2212_v25 }
 0x225   : > { %2223 = vmatprep.subr.bf16.mxu1 %v2283_v9  ;;  %2113 = vmatprep.subr.mxu0 %v2284_v14 }
 0x226   : > { %2115 = vmatprep.mubr.msk.f32.mxu0 %vm2285_vm10, %v2284_v14 }
 0x227   : > { %2143 = vmatmul.mubr.f32.vlgmr.msra.gmra.mrb[0].mxu1 %v1065_v36 }
 0x228   : > { %2225 = vmatpush3.bf16.msra.mxu1 %v2403_v7  ;;  %2114 = vmatpush3.msra.mxu0 %v1094_v47 }
 0x229   : > { %2149 = vmatprep.subr.mxu1 %v2284_v14  ;;  %2214 = vmatprep.subr.bf16.mxu0 %v2283_v9 }
 0x22a   : > { %2151 = vmatprep.mubr.msk.f32.mxu1 %vm2285_vm10, %v2284_v14 }
 0x22b   : > { %2116 = vmatmul.mubr.f32.vlgmr.msra.gmra.mrb[2].mxu0 %v1065_v36 }
 0x22c   : > { %2150 = vmatpush3.msra.mxu1 %v2419_v15  ;;  %2216 = vmatpush3.bf16.msra.mxu0 %v2215_v26 }
 0x22d   : > { %2154 = vmatprep.subr.mxu1 %v2284_v14  ;;  %2122 = vmatprep.subr.mxu0 %v2284_v14 }
 0x22e   : > { %2124 = vmatprep.mubr.msk.f32.mxu0 %vm2285_vm10, %v2284_v14 }
 0x22f   : > { %2152 = vmatmul.mubr.f32.vlgmr.msra.gmra.mrb[0].mxu1 %v1065_v36 }
 0x230   : > { %2155 = vmatpush3.msra.mxu1 %v1483_v48  ;;  %2123 = vmatpush3.msra.mxu0 %v1091_v35 }
 0x231   : > { %2156 = vmatprep.mubr.msk.f32.mxu1 %vm2285_vm10, %v2284_v14  ;;  %2159 = vmatprep.subr.mxu1 %v2284_v14 }
 0x233   : > { %2125 = vmatmul.mubr.f32.vlgmr.msra.gmra.mrb[2].mxu0 %v1066_v37 }
 0x237   : > { %2157 = vmatmul.mubr.f32.vlgmr.msra.gmra.mrb[0].mxu1 %v1552_v55 }
 0x238   : > { %2160 = vmatpush3.msra.mxu1 %v1563_v56  ;;  %2161 = vmatprep.mubr.msk.f32.mxu1 %vm2285_vm10, %v2284_v14 }
 0x239   : > { %2164 = vmatprep.subr.mxu1 %v2284_v14 }
 0x23f   : > { %2162 = vmatmul.mubr.f32.vlgmr.msra.gmra.mrb[0].mxu1 %v1548_v46 }
 0x240   : > { %2165 = vmatpush3.msra.mxu1 %v1560_v50  ;;  %2166 = vmatprep.mubr.msk.f32.mxu1 %vm2285_vm10, %v2284_v14 }
 0x241   : > { %2169 = vmatprep.subr.mxu1 %v2284_v14 }
 0x247   : > { %2167 = vmatmul.mubr.f32.vlgmr.msra.gmra.mrb[0].mxu1 %v1549_v49 }
 0x248   : > { %2170 = vmatpush3.msra.mxu1 %v1483_v48  ;;  %2171 = vmatprep.mubr.msk.f32.mxu1 %vm2285_vm10, %v2284_v14 }
 0x249   : > { %2174 = vmatprep.subr.mxu1 %v2284_v14 }
 0x24f   : > { %2172 = vmatmul.mubr.f32.vlgmr.msra.gmra.mrb[0].mxu1 %v1550_v51 }
 0x250   : > { %2175 = vmatpush3.msra.mxu1 %v1561_v52  ;;  %2176 = vmatprep.mubr.msk.f32.mxu1 %vm2285_vm10, %v2284_v14 }
 0x251   : > { %2179 = vmatprep.subr.mxu1 %v2284_v14 }
 0x257   : > { %2177 = vmatmul.mubr.f32.vlgmr.msra.gmra.mrb[0].mxu1 %v1548_v46 }
 0x258   : > { %2180 = vmatpush3.msra.mxu1 %v1483_v48  ;;  %2181 = vmatprep.mubr.msk.f32.mxu1 %vm2285_vm10, %v2284_v14 }
 0x25f   : > { %2182 = vmatmul.mubr.f32.vlgmr.msra.gmra.mrb[0].mxu1 %v1548_v46 }
 0x306   : > { %v1235_v57 = vpop.f32.mrb[2].mxu0 }
 0x307   : > { %v2126_v58 = vpop.f32.mrb[3].mxu0  ;;  %v2227_v62 = vadd.f32 %v2226_v61, %v1235_v57 }
 0x332   : > { %v1924_v63 = vpop.f32.mrb[0].mxu1 }
 0x333   : > { %v2228_v0 = vadd.f32 %v2227_v62, %v1924_v63  ;;  %v2183_v2 = vpop.f32.mrb[1].mxu1 }
 0x335   : > { %1929 = vst.msk [vmem:[%s332_s25] sm:$0xff] %vm417_vm6, %v2228_v0 }
 0x336 PF: > { %s19_s30 = sadd.s32 1, %s2279_s30  }
 0x337   : > { %p16_p5 = scmp.ge.s32.totalorder %s19_s30, 4  }
 0x339   :  { %18 = sbr.rel (!%p16_p5) target bundleno = 1 (0x1), region = 89 }

</bundles_post_ra>
